<compile_context>
chip_gen: v7x
topology: tpu7x:2x2x1
jax: 0.10.0
libtpu: 0.0.40
codegen_flags: <defaults>
</compile_context>

<pallas_src>
import jax
import jax.numpy as jnp
from jax.experimental import pallas as pl
from jax.experimental.pallas import tpu as pltpu

FRAME_DIM = 128   # D
HIDDEN = 64       # H (zero-padded to 128 inside the kernel)
N_CLASSES = 10    # C (true output width — no output padding)
LANE = 128
H_PAD = 128


def _round_up(n, m):
    return ((n + m - 1) // m) * m


def mlp_kernel(x_ref, w1_ref, w2_ref, b_ref, o_ref):
    # Cast (no-op for the f32 path) happens on VMEM data, not as a wrapper op.
    x = x_ref[...].astype(w1_ref.dtype)
    # Linear 1 (MXU) + bias + ReLU, f32 accumulation.  Hidden dim padded to
    # 128 lanes; padded columns stay exactly 0 through bias(0) and ReLU.
    h = jnp.dot(x, w1_ref[...], preferred_element_type=jnp.float32)
    h = jnp.maximum(h + b_ref[0:1, :], 0.0)
    # Linear 2 (MXU) + bias at the true class width (narrow masked store is
    # negligible next to the HBM-byte savings of a 10-wide writeback).
    out = jnp.dot(h.astype(w2_ref.dtype), w2_ref[...],
                  preferred_element_type=jnp.float32)
    b2 = b_ref[1:2, :]                       # (1, 128) f32
    out = out + b2[:, :out.shape[-1]]        # use first n_classes lanes
    o_ref[...] = out.astype(o_ref.dtype)


def pack_params(w1, b1, w2, b2, *, compute_dtype=jnp.float32):
    """One-time layout glue (call at init, NOT per forward step).

    PyTorch layout:  w1 (H, D), b1 (H,), w2 (C, H), b2 (C,).
    Packed layout:   w1_p (D, H_PAD), w2_p (H_PAD, C), b_p (2, 128) f32.
    Hidden is zero-padded to 128 lanes (exactly 0 through bias+ReLU); the
    output dim stays at its true width C.
    """
    H, D = w1.shape
    C, _ = w2.shape
    w1_p = jnp.zeros((D, H_PAD), compute_dtype).at[:, :H].set(
        w1.T.astype(compute_dtype))
    w2_p = jnp.zeros((H_PAD, C), compute_dtype).at[:H, :].set(
        w2.T.astype(compute_dtype))
    # Biases stay f32 (VPU add / ReLU in f32 — also the right choice on v5e).
    b_p = jnp.zeros((2, LANE), jnp.float32)
    b_p = b_p.at[0, :H].set(b1.astype(jnp.float32))
    b_p = b_p.at[1, :C].set(b2.astype(jnp.float32))
    return w1_p, w2_p, b_p


def classifier_forward(x, params, *, tb=1024):
    """x: (B, FRAME_DIM), any float dtype (bf16 recommended upstream on
    v6e/v7x).  params: output of pack_params().  Returns (B, n_classes)."""
    w1_p, w2_p, b_p = params
    B, D = x.shape
    C = w2_p.shape[1]

    # Batch tile: big enough to amortize per-step overhead, but capped at
    # ~ceil(B/2) (rounded to a sublane multiple) so medium batches still give
    # >=2 "parallel" grid steps for v7x's two TensorCores.
    TB = min(tb, max(8, _round_up(pl.cdiv(B, 2), 8)))
    grid = (pl.cdiv(B, TB),)   # ragged last block handled by Pallas masking

    itemsize = x.dtype.itemsize
    cost = pl.CostEstimate(
        flops=2 * B * D * H_PAD + 2 * B * H_PAD * C,
        transcendentals=0,
        bytes_accessed=(B * D * itemsize + B * C * itemsize
                        + w1_p.size * w1_p.dtype.itemsize
                        + w2_p.size * w2_p.dtype.itemsize
                        + b_p.size * 4))

    return pl.pallas_call(
        mlp_kernel,
        out_shape=jax.ShapeDtypeStruct((B, C), x.dtype),
        grid=grid,
        in_specs=[
            pl.BlockSpec((TB, D), lambda i: (i, 0)),      # x tile (pipelined)
            pl.BlockSpec((D, H_PAD), lambda i: (0, 0)),   # resident weights
            pl.BlockSpec((H_PAD, C), lambda i: (0, 0)),
            pl.BlockSpec((2, LANE), lambda i: (0, 0)),    # packed biases
        ],
        # Narrow (true-width) output block: last dim == full array dim.
        out_specs=pl.BlockSpec((TB, C), lambda i: (i, 0)),
        compiler_params=pltpu.CompilerParams(
            dimension_semantics=("parallel",)),
        cost_estimate=cost,
    )(x, w1_p, w2_p, b_p)


def reference_forward(x, w1, b1, w2, b2):
    h = jnp.maximum(x @ w1.T + b1, 0.0)
    return h @ w2.T + b2


if __name__ == "__main__":
    key = jax.random.PRNGKey(0)
    kx, k1, k2, k3, k4 = jax.random.split(key, 5)

    B = 8  # small batch
    x = jax.random.normal(kx, (B, FRAME_DIM), dtype=jnp.float32)

    # Deterministic parameter init (PyTorch Linear shapes: (out, in) / (out,)).
    w1 = jax.random.normal(k1, (HIDDEN, FRAME_DIM), dtype=jnp.float32) * 0.05
    b1 = jax.random.normal(k2, (HIDDEN,), dtype=jnp.float32) * 0.05
    w2 = jax.random.normal(k3, (N_CLASSES, HIDDEN), dtype=jnp.float32) * 0.05
    b2 = jax.random.normal(k4, (N_CLASSES,), dtype=jnp.float32) * 0.05

    ref = reference_forward(x, w1, b1, w2, b2)

    # f32 path (matches PyTorch semantics exactly).
    params_f32 = pack_params(w1, b1, w2, b2, compute_dtype=jnp.float32)
    out = jax.block_until_ready(classifier_forward(x, params_f32))
    assert out.shape == (B, N_CLASSES)
    assert jnp.allclose(out, ref, atol=1e-4, rtol=1e-4), "f32 mismatch vs reference"

    # Multi-tile + ragged-batch path (B not a multiple of the tile size;
    # exercises the masked last block — no wrapper pad/slice anywhere).
    B2 = 20
    x2 = jax.random.normal(kx, (B2, FRAME_DIM), dtype=jnp.float32)
    ref2 = reference_forward(x2, w1, b1, w2, b2)
    out2 = jax.block_until_ready(classifier_forward(x2, params_f32, tb=8))
    assert out2.shape == (B2, N_CLASSES)
    assert jnp.allclose(out2, ref2, atol=1e-4, rtol=1e-4), "tiled mismatch vs reference"

    # bf16 path for v6e/v7x bandwidth: activations arrive as bf16 (upstream
    # decision, no per-forward wrapper cast); f32 MXU accumulation, f32
    # bias/ReLU.  f32 remains the documented exact-match path.
    params_bf16 = pack_params(w1, b1, w2, b2, compute_dtype=jnp.bfloat16)
    x_bf16 = x.astype(jnp.bfloat16)   # simulates bf16 activations in HBM
    out_bf16 = jax.block_until_ready(classifier_forward(x_bf16, params_bf16))
    assert out_bf16.shape == (B, N_CLASSES)
    assert jnp.allclose(out_bf16.astype(jnp.float32), ref, atol=5e-2, rtol=5e-2), \
        "bf16 mismatch vs reference"

    print("KERNEL_OK")
</pallas_src>

<mosaic_0001>
module attributes {stable_mosaic.version = 11 : i64} {
  func.func @mlp_kernel(%arg0: i32, %arg1: memref<8x128xf32, #tpu.memory_space<vmem>>, %arg2: memref<128x128xf32, #tpu.memory_space<vmem>>, %arg3: memref<128x10xf32, #tpu.memory_space<vmem>>, %arg4: memref<2x128xf32, #tpu.memory_space<vmem>>, %arg5: memref<8x10xf32, #tpu.memory_space<vmem>>) attributes {dimension_semantics = [#tpu.dimension_semantics<parallel>], iteration_bounds = array<i64: 1>, scalar_prefetch = 0 : i64, scratch_operands = 0 : i64, tpu.core_type = #tpu.core_type<tc>, window_params = [{transform_indices = @transform_0, window_bounds = array<i64: 8, 128>}, {pipeline_mode = #tpu.pipeline_mode<synchronous>, transform_indices = @transform_1, window_bounds = array<i64: 128, 128>}, {pipeline_mode = #tpu.pipeline_mode<synchronous>, transform_indices = @transform_2, window_bounds = array<i64: 128, 10>}, {pipeline_mode = #tpu.pipeline_mode<synchronous>, transform_indices = @transform_3, window_bounds = array<i64: 2, 128>}, {transform_indices = @transform_4, window_bounds = array<i64: 8, 10>}]} {
    %c0 = arith.constant 0 : index
    %c0_0 = arith.constant 0 : index
    %0 = vector.load %arg1[%c0, %c0_0] : memref<8x128xf32, #tpu.memory_space<vmem>>, vector<8x128xf32>
    %c0_1 = arith.constant 0 : index
    %c0_2 = arith.constant 0 : index
    %1 = vector.load %arg2[%c0_1, %c0_2] : memref<128x128xf32, #tpu.memory_space<vmem>>, vector<128x128xf32>
    %cst = arith.constant dense<0.000000e+00> : vector<8x128xf32>
    %2 = tpu.matmul %0, %1, %cst {dimension_numbers = #tpu.dot_dimension_numbers<[1], [0], [0], [1], [0, 0, 1, 1], [], []>} : vector<8x128xf32>, vector<128x128xf32>, vector<8x128xf32> -> vector<8x128xf32>
    %c0_3 = arith.constant 0 : index
    %c0_4 = arith.constant 0 : index
    %3 = vector.load %arg4[%c0_3, %c0_4] : memref<2x128xf32, #tpu.memory_space<vmem>>, vector<1x128xf32>
    %4 = vector.broadcast %3 : vector<1x128xf32> to vector<8x128xf32>
    %5 = arith.addf %2, %4 : vector<8x128xf32>
    %cst_5 = arith.constant 0.000000e+00 : f32
    %6 = vector.broadcast %cst_5 : f32 to vector<8x128xf32>
    %7 = arith.maximumf %5, %6 : vector<8x128xf32>
    %c0_6 = arith.constant 0 : index
    %c0_7 = arith.constant 0 : index
    %8 = vector.load %arg3[%c0_6, %c0_7] : memref<128x10xf32, #tpu.memory_space<vmem>>, vector<128x10xf32>
    %cst_8 = arith.constant dense<0.000000e+00> : vector<8x10xf32>
    %9 = tpu.matmul %7, %8, %cst_8 {dimension_numbers = #tpu.dot_dimension_numbers<[1], [0], [0], [1], [0, 0, 1, 1], [], []>} : vector<8x128xf32>, vector<128x10xf32>, vector<8x10xf32> -> vector<8x10xf32>
    %c1 = arith.constant 1 : index
    %c0_9 = arith.constant 0 : index
    %10 = vector.load %arg4[%c1, %c0_9] : memref<2x128xf32, #tpu.memory_space<vmem>>, vector<1x128xf32>
    %11 = vector.extract_strided_slice %10 {offsets = [0, 0], sizes = [1, 10], strides = [1, 1]} : vector<1x128xf32> to vector<1x10xf32>
    %12 = vector.broadcast %11 : vector<1x10xf32> to vector<8x10xf32>
    %13 = arith.addf %9, %12 : vector<8x10xf32>
    %c0_10 = arith.constant 0 : index
    %c0_11 = arith.constant 0 : index
    %14 = vector.load %arg5[%c0_10, %c0_11] : memref<8x10xf32, #tpu.memory_space<vmem>>, vector<8x10xf32>
    tpu.vector_store %arg5[%c0_10, %c0_11], %13 {strides = array<i32>} : memref<8x10xf32, #tpu.memory_space<vmem>>, vector<8x10xf32>,
    return
  }
  func.func @transform_0(%arg0: i32) -> (i32, i32) {
    %c0_i32 = arith.constant 0 : i32
    %c0_i32_0 = arith.constant 0 : i32
    return %arg0, %c0_i32 : i32, i32
  }
  func.func @transform_1(%arg0: i32) -> (i32, i32) {
    %c0_i32 = arith.constant 0 : i32
    %c0_i32_0 = arith.constant 0 : i32
    %c0_i32_1 = arith.constant 0 : i32
    return %c0_i32, %c0_i32_0 : i32, i32
  }
  func.func @transform_2(%arg0: i32) -> (i32, i32) {
    %c0_i32 = arith.constant 0 : i32
    %c0_i32_0 = arith.constant 0 : i32
    %c0_i32_1 = arith.constant 0 : i32
    return %c0_i32, %c0_i32_0 : i32, i32
  }
  func.func @transform_3(%arg0: i32) -> (i32, i32) {
    %c0_i32 = arith.constant 0 : i32
    %c0_i32_0 = arith.constant 0 : i32
    %c0_i32_1 = arith.constant 0 : i32
    return %c0_i32, %c0_i32_0 : i32, i32
  }
  func.func @transform_4(%arg0: i32) -> (i32, i32) {
    %c0_i32 = arith.constant 0 : i32
    %c0_i32_0 = arith.constant 0 : i32
    return %arg0, %c0_i32 : i32, i32
  }
}

</mosaic_0001>

<bundles_post_ra>
// kernel: tpu_custom_call.1
= control target key start
LH: loop header
LB: loop body
LE: loop exit
PB: predicated region body
PF: predicated region fallthrough
CT: control target
= control target key end

     0   :  { %v400_v3 = vmov 0.0|0.0   ;;  %vm401_vm0 = vmmov 0   ;;  %v402_v6 = vmov 0.0   ;;  %s562_s0 = inlined_call_operand.vmem [shape: f32[8,128], index: 0, kind: input, shape index: {}]   ;;  %s563_s1 = inlined_call_operand.vmem [shape: f32[128,128], index: 1, kind: input, shape index: {}]   ;;  %s564_s2 = inlined_call_operand.vmem [shape: f32[128,10], index: 2, kind: input, shape index: {}]   ;;  %s565_s3 = inlined_call_operand.vmem [shape: f32[2,128], index: 3, kind: input, shape index: {}]   ;;  %s566_s4 = inlined_call_operand.hbm [shape: f32[8,10], index: 4, kind: output, shape index: {}]  }
   0x1   :  { %v19_v0 = vld [vmem:[%s563_s1] sm:$0xff]  ;;  %v20_v1 = vld [vmem:[%s563_s1 + $0x8] sm:$0xff]  ;;  %v21_v2 = vld [vmem:[%s563_s1 + $0x10] sm:$0xff]  ;;  %324 = vmatprep.subr.bf16.mxu0 %v400_v3  ;;  %286 = vmatprep.mubr.msk.f32.mxu0 %vm401_vm0, %v402_v6 }
   0x2   :  { %v325_v4 = vpack.c.bf16 %v20_v1, %v19_v0  ;;  %v22_v5 = vld [vmem:[%s563_s1 + $0x18] sm:$0xff]  ;;  %348 = vmatprep.subr.bf16.mxu1 %v400_v3  ;;  %321 = vmatprep.mubr.msk.f32.mxu1 %vm401_vm0, %v402_v6  ;;  %v23_v8 = vld [vmem:[%s563_s1 + $0x20] sm:$0xff]  ;;  %v24_v9 = vld [vmem:[%s563_s1 + $0x28] sm:$0xff] }
   0x3   :  { %v328_v7 = vpack.c.bf16 %v22_v5, %v21_v2  ;;  %v111_v10 = vld [vmem:[%s564_s2] sm:$0xff]  ;;  %v112_v11 = vld [vmem:[%s564_s2 + $0x8] sm:$0xff]  ;;  %v113_v12 = vld [vmem:[%s564_s2 + $0x10] sm:$0xff]  ;;  %v331_v14 = vpack.c.bf16 %v24_v9, %v23_v8 }
   0x4   :  { %326 = vmatpush3.bf16.msra.mxu0 %v325_v4  ;;  %v114_v13 = vld [vmem:[%s564_s2 + $0x18] sm:$0xff]  ;;  %v349_v15 = vpack.c.bf16 %v112_v11, %v111_v10  ;;  %v25_v16 = vld [vmem:[%s563_s1 + $0x30] sm:$0xff]  ;;  %v115_v19 = vld [vmem:[%s564_s2 + $0x20] sm:$0xff] }
   0x5   :  { %327 = vmatprep.subr.bf16.mxu0 %v400_v3  ;;  %v26_v17 = vld [vmem:[%s563_s1 + $0x38] sm:$0xff]  ;;  %v352_v18 = vpack.c.bf16 %v114_v13, %v113_v12  ;;  %v116_v20 = vld [vmem:[%s564_s2 + $0x28] sm:$0xff] }
   0x6   :  { %350 = vmatpush3.bf16.msra.mxu1 %v349_v15 }
   0x7   :  { %351 = vmatprep.subr.bf16.mxu1 %v400_v3 }
   0x8   :  { %329 = vmatpush3.bf16.msra.mxu0 %v328_v7 }
   0x9   :  { %330 = vmatprep.subr.bf16.mxu0 %v400_v3 }
   0xa   :  { %9 = vsyncpa [#allocation3], 0  ;;  %v334_v21 = vpack.c.bf16 %v26_v17, %v25_v16  ;;  %v27_v22 = vld [vmem:[%s563_s1 + $0x40] sm:$0xff]  ;;  %v28_v23 = vld [vmem:[%s563_s1 + $0x48] sm:$0xff]  ;;  %353 = vmatpush3.bf16.msra.mxu1 %v352_v18  ;;  %v355_v24 = vpack.c.bf16 %v116_v20, %v115_v19  ;;  %s403_s5 = smov [#allocation2]   ;;  %vm202_vm1 = vcmask 80896  }
   0xb   :  { %354 = vmatprep.subr.bf16.mxu1 %v400_v3  ;;  %v117_v25 = vld [vmem:[%s564_s2 + $0x30] sm:$0xff]  ;;  %v118_v26 = vld [vmem:[%s564_s2 + $0x38] sm:$0xff]  ;;  %v337_v27 = vpack.c.bf16 %v28_v23, %v27_v22  ;;  %v119_v31 = vld [vmem:[%s564_s2 + $0x40] sm:$0xff]  ;;  %s210_s6 = sshll.u32 %s403_s5, 4  ;;  %s211_s6 = int_to_ptr.vmem [resolvable:$true] %s210_s6 }
   0xc   :  { %332 = vmatpush3.bf16.msra.mxu0 %v331_v14  ;;  %v29_v28 = vld [vmem:[%s563_s1 + $0x50] sm:$0xff]  ;;  %v30_v29 = vld [vmem:[%s563_s1 + $0x58] sm:$0xff]  ;;  %v358_v30 = vpack.c.bf16 %v118_v26, %v117_v25  ;;  %v120_v32 = vld [vmem:[%s564_s2 + $0x48] sm:$0xff]  ;;  %p381_p1 = scmp.lt.s32.totalorder %s211_s6, %s211_s6 }
   0xd   :  { %333 = vmatprep.subr.bf16.mxu0 %v400_v3  ;;  %v340_v33 = vpack.c.bf16 %v30_v29, %v29_v28  ;;  %v31_v34 = vld [vmem:[%s563_s1 + $0x60] sm:$0xff]  ;;  %v32_v35 = vld [vmem:[%s563_s1 + $0x68] sm:$0xff]  ;;  %v361_v36 = vpack.c.bf16 %v120_v32, %v119_v31  ;;  %v121_v37 = vld [vmem:[%s564_s2 + $0x50] sm:$0xff] }
   0xe   :  { %356 = vmatpush3.bf16.msra.mxu1 %v355_v24  ;;  %v122_v38 = vld [vmem:[%s564_s2 + $0x58] sm:$0xff]  ;;  %v343_v39 = vpack.c.bf16 %v32_v35, %v31_v34  ;;  %v33_v40 = vld [vmem:[%s563_s1 + $0x70] sm:$0xff]  ;;  %v123_v43 = vld [vmem:[%s564_s2 + $0x60] sm:$0xff] }
   0xf   :  { %357 = vmatprep.subr.bf16.mxu1 %v400_v3  ;;  %v34_v41 = vld [vmem:[%s563_s1 + $0x78] sm:$0xff]  ;;  %v364_v42 = vpack.c.bf16 %v122_v38, %v121_v37  ;;  %v124_v44 = vld [vmem:[%s564_s2 + $0x68] sm:$0xff]  ;;  %v18_v47 = vld [vmem:[%s562_s0] sm:$0xff] }
  0x10   :  { %335 = vmatpush3.bf16.msra.mxu0 %v334_v21  ;;  %v346_v45 = vpack.c.bf16 %v34_v41, %v33_v40  ;;  %v367_v46 = vpack.c.bf16 %v124_v44, %v123_v43  ;;  %v125_v48 = vld [vmem:[%s564_s2 + $0x70] sm:$0xff]  ;;  %v126_v49 = vld [vmem:[%s564_s2 + $0x78] sm:$0xff]  ;;  %v218_v51 = vld [vmem:[%s565_s3] ss:$0 sm:$0xff]  ;;  %s376_s2 = scalar_lea.vmem %s211_s6, 128 }
  0x11   :  { %336 = vmatprep.subr.bf16.mxu0 %v400_v3  ;;  %v370_v50 = vpack.c.bf16 %v126_v49, %v125_v48  ;;  %v219_v56 = vld [vmem:[%s565_s3 + $0x1] ss:$0 sm:$0xff]  ;;  %p377_p0 = scmp.ne.s32.totalorder %s211_s6, %s376_s2  ;;  %p382_p2 = scmp.lt.s32.totalorder %s376_s2, %s376_s2 }
  0x12   :  { %359 = vmatpush3.bf16.msra.mxu1 %v358_v30 }
  0x13   :  { %360 = vmatprep.subr.bf16.mxu1 %v400_v3  ;;  %p383_p3 = por %p382_p2, %p381_p1 }
  0x14   :  { %338 = vmatpush3.bf16.msra.mxu0 %v337_v27 }
  0x15   :  { %339 = vmatprep.subr.bf16.mxu0 %v400_v3  ;;  %p384_p4 = pnand %p383_p3, %p377_p0 }
  0x16   :  { %362 = vmatpush3.bf16.msra.mxu1 %v361_v36 }
  0x17   :  { %363 = vmatprep.subr.bf16.mxu1 %v400_v3 }
  0x18   :  { %341 = vmatpush3.bf16.msra.mxu0 %v340_v33 }
  0x19   :  { %342 = vmatprep.subr.bf16.mxu0 %v400_v3 }
  0x1a   :  { %365 = vmatpush3.bf16.msra.mxu1 %v364_v42 }
  0x1b   :  { %366 = vmatprep.subr.bf16.mxu1 %v400_v3 }
  0x1c   :  { %344 = vmatpush3.bf16.msra.mxu0 %v343_v39 }
  0x1d   :  { %345 = vmatprep.subr.bf16.mxu0 %v400_v3 }
  0x1e   :  { %368 = vmatpush3.bf16.msra.mxu1 %v367_v46 }
  0x1f   :  { %369 = vmatprep.subr.bf16.mxu1 %v400_v3 }
  0x20   :  { %347 = vmatpush3.bf16.msra.mxu0 %v346_v45 }
  0x22   :  { %371 = vmatpush3.bf16.msra.mxu1 %v370_v50 }
  0x23   :  { %287 = vmatmul.mubr.f32.vlgmr.msra.gmra.mrb[0].mxu0 %v18_v47 }
  0xf6   :  { %v106_v52 = vpop.f32.mrb[0].mxu0 }
  0xf7   :  { %v107_v53 = vadd.f32 %v218_v51, %v106_v52  ;;  %v288_v54 = vpop.f32.mrb[1].mxu0 }
  0xf9   :  { %v110_v55 = vmax.f32 %v107_v53, 0.0 }
  0xfb   :  { %322 = vmatmul.mubr.f32.vlgmr.msra.gmra.mrb[0].mxu1 %v110_v55 }
 0x1ce   :  { %v198_v57 = vpop.f32.mrb[0].mxu1 }
 0x1cf   :  { %v199_v58 = vadd.f32 %v219_v56, %v198_v57  ;;  %v323_v59 = vpop.f32.mrb[1].mxu1 }
 0x1d1   :  { %203 = vst.msk [vmem:[#allocation2] sm:$0xff] %vm202_vm1, %v199_v58 }
 0x1d2   :  { %387 = shalt.err (!%p384_p4)
}
 0x1d3   :  { %s388_s9 = scalar_lea.hbm %s566_s4, 128 }
 0x1d4   :  { %p389_p5 = scmp.ne.s32.totalorder %s566_s4, %s388_s9  ;;  %p392_p6 = scmp.lt.u32.totalorder %s388_s9, %s566_s4 }
 0x1d6   :  { %p394_p7 = pnand %p392_p6, %p389_p5 }
 0x1d8   :  { %397 = shalt.err (!%p394_p7)
}
 0x1d9   :  { %213 = dma.vmem_to_hbm [thread:$0]  %s211_s6, 128, %s566_s4, [#allocation3]  }
 0x1da   :  { %398 = dma.done.wait [#allocation3], 128  }
 0x1db   :  { %399 = vsyncadd [#allocation3], 4294967168 }
 0x1dc   :  { %217 = vsyncpa [#allocation3], 1 }

</bundles_post_ra>
